<compile_context>
chip_gen: v7x
topology: tpu7x:2x2x1
jax: 0.10.0
libtpu: 0.0.40
codegen_flags: <defaults>
</compile_context>

<pallas_src>
import jax
import jax.numpy as jnp
from jax.experimental import pallas as pl
from jax.experimental.pallas import tpu as pltpu

# Stand-ins for stemseg constants (glue only, no compute).
MODEL_OUTPUT_OTHERS = "others"
MODEL_OUTPUT_OPT_LOSSES = "optimization_losses"
LOSS_SEMSEG = "semseg"
WEIGHT_SEMSEG = 1.0  # cfg.TRAINING.LOSSES.WEIGHT_SEMSEG


def _ce_reduce_kernel(logits_ref, tgt_ref, ce_sum_ref, acc_ref):
    """Per grid step: one frame s = (n, t), one pixel tile p.

    logits_ref : (1, C, TP) f32   native-layout logits (classes in sublanes)
    tgt_ref    : (1, 1, TP) i32   ground-truth class index per pixel
    ce_sum_ref : (1, 1, 1)  f32   per-frame CE sum (written at the last tile)
    acc_ref    : (1, TP)    f32   lane-wide VMEM accumulator (persists over p)
    """
    p = pl.program_id(1)

    @pl.when(p == 0)
    def _():
        acc_ref[...] = jnp.zeros_like(acc_ref)

    logits = logits_ref[0]            # (C, TP)
    tgt = tgt_ref[0]                  # (1, TP)

    # Numerically-stable log-softmax cross entropy over the class axis (sublanes).
    m = jnp.max(logits, axis=0, keepdims=True)                                # (1, TP)
    lse = m + jnp.log(jnp.sum(jnp.exp(logits - m), axis=0, keepdims=True))    # (1, TP)

    cls_ids = jax.lax.broadcasted_iota(jnp.int32, logits.shape, 0)            # (C, TP)
    tgt_logit = jnp.sum(jnp.where(cls_ids == tgt, logits, 0.0),
                        axis=0, keepdims=True)                                # (1, TP)

    # Lane-resident accumulation: free VPU adds, no per-step cross-lane reduce.
    acc_ref[...] += lse - tgt_logit

    @pl.when(p == pl.num_programs(1) - 1)
    def _():
        ce_sum_ref[...] = jnp.sum(acc_ref[...], axis=-1, keepdims=True).reshape(1, 1, 1)


def cross_entropy_loss(semseg_logits, semseg_masks, ignore_masks, output_dict,
                       tile_pixels=2048):
    """
    semseg_logits: [N, T, C, H, W] float32   (native PyTorch layout; no transpose)
    semseg_masks : [N, T, H, W]    int       class indices
    ignore_masks : [N, T, H, W]    0/1
    """
    N, T, C, H, W = semseg_logits.shape
    HW = H * W
    P = T * HW

    assert HW % 128 == 0, "H*W must be a multiple of 128 (TPU lane width)"
    # Pick the largest lane tile (multiple of 128) that divides H*W.
    tile = min(tile_pixels, HW)
    tile -= tile % 128
    while HW % tile:
        tile -= 128
    num_ptiles = HW // tile

    # Free contiguous reshapes only -- no HBM transpose of the logits stream.
    logits = semseg_logits.astype(jnp.float32).reshape(N * T, C, HW)
    tgt = semseg_masks.astype(jnp.int32).reshape(N * T, 1, HW)

    grid_spec = pltpu.PrefetchScalarGridSpec(
        num_scalar_prefetch=0,
        grid=(N * T, num_ptiles),
        in_specs=[
            # NOTE(v7x): pipeline_mode=pl.Buffered(3) on the logits spec can be
            # added to hide DMA issue latency at 3.2 TB/s; buffers stay tiny.
            pl.BlockSpec((1, C, tile), lambda s, p: (s, 0, p)),
            pl.BlockSpec((1, 1, tile), lambda s, p: (s, 0, p)),
        ],
        out_specs=pl.BlockSpec((1, 1, 1), lambda s, p: (s, 0, 0)),
        scratch_shapes=[pltpu.VMEM((1, tile), jnp.float32)],
    )

    ce_sum = pl.pallas_call(
        _ce_reduce_kernel,
        out_shape=jax.ShapeDtypeStruct((N * T, 1, 1), jnp.float32),
        grid_spec=grid_spec,
        compiler_params=pltpu.CompilerParams(
            dimension_semantics=("parallel", "arbitrary")),
    )(logits, tgt)

    # Scalar epilogue, mirroring the PyTorch arithmetic exactly.
    seq_ce_sum = jnp.sum(ce_sum.reshape(N, T), axis=1)                     # (N,)
    nonign_sum = jnp.sum(1.0 - ignore_masks.astype(jnp.float32),
                         axis=(1, 2, 3))                                   # (N,)
    seq_mean_ce = seq_ce_sum / jnp.float32(P)          # F.cross_entropy reduction='mean'
    # Faithful to PyTorch: scalar * mask -> sum / mask.sum  (0/0 -> NaN if fully ignored)
    seq_loss = (seq_mean_ce * nonign_sum) / nonign_sum
    loss = jnp.sum(seq_loss) / jnp.float32(N)

    output_dict.setdefault(MODEL_OUTPUT_OTHERS, {})[LOSS_SEMSEG] = loss
    output_dict.setdefault(MODEL_OUTPUT_OPT_LOSSES, {})[LOSS_SEMSEG] = loss * WEIGHT_SEMSEG
    return loss


def _reference_loss(semseg_logits, semseg_masks, ignore_masks):
    """Pure-JAX reference mirroring the PyTorch module."""
    N = semseg_logits.shape[0]
    loss = 0.0
    for n in range(N):
        logits = semseg_logits[n]                               # [T, C, H, W]
        tgt = semseg_masks[n]                                   # [T, H, W]
        logp = jax.nn.log_softmax(logits, axis=1)
        ce = -jnp.take_along_axis(logp, tgt[:, None, :, :], axis=1)[:, 0]
        seq_loss = jnp.mean(ce)
        nonign = 1.0 - ignore_masks[n].astype(jnp.float32)
        seq_loss = jnp.sum(seq_loss * nonign) / jnp.sum(nonign)
        loss = loss + seq_loss
    return loss / N


if __name__ == "__main__":
    key = jax.random.PRNGKey(0)
    k1, k2, k3 = jax.random.split(key, 3)

    N, T, C, H, W = 2, 2, 4, 16, 16
    semseg_logits = jax.random.normal(k1, (N, T, C, H, W), dtype=jnp.float32)
    semseg_masks = jax.random.randint(k2, (N, T, H, W), 0, C, dtype=jnp.int32)
    ignore_masks = jax.random.bernoulli(k3, 0.1, (N, T, H, W)).astype(jnp.int32)

    output_dict = {}
    loss = cross_entropy_loss(semseg_logits, semseg_masks, ignore_masks, output_dict)
    loss = jax.block_until_ready(loss)

    ref = _reference_loss(semseg_logits, semseg_masks, ignore_masks)
    assert jnp.allclose(loss, ref, rtol=1e-5, atol=1e-5), (loss, ref)

    print("KERNEL_OK")
</pallas_src>

<mosaic_0001>
module attributes {stable_mosaic.version = 11 : i64} {
  func.func @_ce_reduce_kernel(%arg0: i32, %arg1: i32, %arg2: memref<1x4x256xf32, #tpu.memory_space<vmem>>, %arg3: memref<1x1x256xi32, #tpu.memory_space<vmem>>, %arg4: memref<1x1x1xf32, #tpu.memory_space<vmem>>, %arg5: memref<1x256xf32, #tpu.memory_space<vmem>>) attributes {dimension_semantics = [#tpu.dimension_semantics<parallel>, #tpu.dimension_semantics<arbitrary>], iteration_bounds = array<i64: 4, 1>, scalar_prefetch = 0 : i64, scratch_operands = 1 : i64, tpu.core_type = #tpu.core_type<tc>, window_params = [{transform_indices = @transform_0, window_bounds = array<i64: 1, 4, 256>}, {transform_indices = @transform_1, window_bounds = array<i64: 1, 1, 256>}, {transform_indices = @transform_2, window_bounds = array<i64: 1, 1, 1>}]} {
    %c0_i32 = arith.constant 0 : i32
    %0 = arith.cmpi eq, %arg1, %c0_i32 : i32
    %1 = arith.extui %0 : i1 to i32
    %c0_i32_0 = arith.constant 0 : i32
    %2 = arith.cmpi ne, %1, %c0_i32_0 : i32
    scf.if %2 {
      %cst_15 = arith.constant 0.000000e+00 : f32
      %30 = vector.broadcast %cst_15 : f32 to vector<1x256xf32>
      %c0_16 = arith.constant 0 : index
      %c0_17 = arith.constant 0 : index
      %31 = vector.load %arg5[%c0_16, %c0_17] : memref<1x256xf32, #tpu.memory_space<vmem>>, vector<1x256xf32>
      tpu.vector_store %arg5[%c0_16, %c0_17], %30 {strides = array<i32>} : memref<1x256xf32, #tpu.memory_space<vmem>>, vector<1x256xf32>,
    } else {
    }
    %c0 = arith.constant 0 : index
    %c0_1 = arith.constant 0 : index
    %c0_2 = arith.constant 0 : index
    %3 = vector.load %arg2[%c0, %c0_1, %c0_2] : memref<1x4x256xf32, #tpu.memory_space<vmem>>, vector<1x4x256xf32>
    %4 = vector.shape_cast %3 : vector<1x4x256xf32> to vector<4x256xf32>
    %c0_3 = arith.constant 0 : index
    %c0_4 = arith.constant 0 : index
    %c0_5 = arith.constant 0 : index
    %5 = vector.load %arg3[%c0_3, %c0_4, %c0_5] : memref<1x1x256xi32, #tpu.memory_space<vmem>>, vector<1x1x256xi32>
    %6 = vector.shape_cast %5 : vector<1x1x256xi32> to vector<1x256xi32>
    %cst = arith.constant dense<0xFF800000> : vector<256xf32>
    %7 = vector.multi_reduction <maximumf>, %4, %cst [0] : vector<4x256xf32> to vector<256xf32>
    %8 = vector.shape_cast %7 : vector<256xf32> to vector<1x256xf32>
    %9 = vector.broadcast %8 : vector<1x256xf32> to vector<4x256xf32>
    %10 = arith.subf %4, %9 : vector<4x256xf32>
    %11 = math.exp %10 : vector<4x256xf32>
    %cst_6 = arith.constant dense<0.000000e+00> : vector<256xf32>
    %12 = vector.multi_reduction <add>, %11, %cst_6 [0] : vector<4x256xf32> to vector<256xf32>
    %13 = vector.shape_cast %12 : vector<256xf32> to vector<1x256xf32>
    %14 = math.log %13 : vector<1x256xf32>
    %15 = arith.addf %8, %14 : vector<1x256xf32>
    %16 = tpu.iota {dimensions = array<i32: 0>} : vector<4x256xi32>
    %17 = vector.broadcast %6 : vector<1x256xi32> to vector<4x256xi32>
    %18 = arith.cmpi eq, %16, %17 : vector<4x256xi32>
    %cst_7 = arith.constant 0.000000e+00 : f32
    %19 = vector.broadcast %cst_7 : f32 to vector<4x256xf32>
    %20 = arith.select %18, %4, %19 : vector<4x256xi1>, vector<4x256xf32>
    %cst_8 = arith.constant dense<0.000000e+00> : vector<256xf32>
    %21 = vector.multi_reduction <add>, %20, %cst_8 [0] : vector<4x256xf32> to vector<256xf32>
    %22 = vector.shape_cast %21 : vector<256xf32> to vector<1x256xf32>
    %c0_9 = arith.constant 0 : index
    %c0_10 = arith.constant 0 : index
    %23 = vector.load %arg5[%c0_9, %c0_10] : memref<1x256xf32, #tpu.memory_space<vmem>>, vector<1x256xf32>
    %24 = arith.subf %15, %22 : vector<1x256xf32>
    %25 = arith.addf %23, %24 : vector<1x256xf32>
    %c0_11 = arith.constant 0 : index
    %c0_12 = arith.constant 0 : index
    %26 = vector.load %arg5[%c0_11, %c0_12] : memref<1x256xf32, #tpu.memory_space<vmem>>, vector<1x256xf32>
    tpu.vector_store %arg5[%c0_11, %c0_12], %25 {strides = array<i32>} : memref<1x256xf32, #tpu.memory_space<vmem>>, vector<1x256xf32>,
    %c0_i32_13 = arith.constant 0 : i32
    %27 = arith.cmpi eq, %arg1, %c0_i32_13 : i32
    %28 = arith.extui %27 : i1 to i32
    %c0_i32_14 = arith.constant 0 : i32
    %29 = arith.cmpi ne, %28, %c0_i32_14 : i32
    scf.if %29 {
      %c0_15 = arith.constant 0 : index
      %c0_16 = arith.constant 0 : index
      %30 = vector.load %arg5[%c0_15, %c0_16] : memref<1x256xf32, #tpu.memory_space<vmem>>, vector<1x256xf32>
      %cst_17 = arith.constant dense<0.000000e+00> : vector<1xf32>
      %31 = vector.multi_reduction <add>, %30, %cst_17 [1] : vector<1x256xf32> to vector<1xf32>
      %32 = vector.shape_cast %31 : vector<1xf32> to vector<1x1xf32>
      %33 = vector.shape_cast %32 : vector<1x1xf32> to vector<1x1x1xf32>
      %c0_18 = arith.constant 0 : index
      %c0_19 = arith.constant 0 : index
      %c0_20 = arith.constant 0 : index
      %34 = vector.load %arg4[%c0_18, %c0_19, %c0_20] : memref<1x1x1xf32, #tpu.memory_space<vmem>>, vector<1x1x1xf32>
      tpu.vector_store %arg4[%c0_18, %c0_19, %c0_20], %33 {strides = array<i32>} : memref<1x1x1xf32, #tpu.memory_space<vmem>>, vector<1x1x1xf32>,
    } else {
    }
    return
  }
  func.func @transform_0(%arg0: i32, %arg1: i32) -> (i32, i32, i32) {
    %c0_i32 = arith.constant 0 : i32
    %c0_i32_0 = arith.constant 0 : i32
    return %arg0, %c0_i32, %arg1 : i32, i32, i32
  }
  func.func @transform_1(%arg0: i32, %arg1: i32) -> (i32, i32, i32) {
    %c0_i32 = arith.constant 0 : i32
    %c0_i32_0 = arith.constant 0 : i32
    return %arg0, %c0_i32, %arg1 : i32, i32, i32
  }
  func.func @transform_2(%arg0: i32, %arg1: i32) -> (i32, i32, i32) {
    %c0_i32 = arith.constant 0 : i32
    %c0_i32_0 = arith.constant 0 : i32
    %c0_i32_1 = arith.constant 0 : i32
    return %arg0, %c0_i32, %c0_i32_0 : i32, i32, i32
  }
}

</mosaic_0001>

<bundles_post_ra>
// kernel: tpu_custom_call.1
= control target key start
LH: loop header
LB: loop body
LE: loop exit
PB: predicated region body
PF: predicated region fallthrough
CT: control target
= control target key end

     0   :  { %7 = vsyncpa [#allocation4], 0  ;;  %s859_s0 = inlined_call_operand.hbm [shape: f32[4,4,256], index: 0, kind: input, shape index: {}]   ;;  %s860_s1 = inlined_call_operand.hbm [shape: s32[4,1,256], index: 1, kind: input, shape index: {}]   ;;  %s861_s2 = inlined_call_operand.vmem [shape: f32[4,1,1], index: 2, kind: output, shape index: {}]  }
   0x1   :  { %9 = vsyncpa [#allocation4 + $0x1], 0 }
   0x2   :  { %10 = vsyncpa [#allocation6], 0 }
   0x3   :  { %12 = vsyncpa [#allocation6 + $0x1], 0  ;;  %s672_s9 = smov 0   ;;  %s674_s10 = smov 0  }
   0x4   :  { %s676_s11 = smov 0   ;;  %s678_s12 = smov 0  }
   0x5   :  { %s680_s13 = smov 0   ;;  %s682_s14 = smov 0  }
   0x6 LB: > { %s451_s15 = sadd.s32 4294967295, %s651_s14   ;;  %s30_s16 = sadd.s32 1, %s647_s13  ;;  %s651_s14 = sphi %s682_s14, %s18_s14   ;;  %s647_s13 = sphi %s680_s13, %s877_s13   ;;  %s643_s12 = sphi %s678_s12, %s876_s12   ;;  %s639_s11 = sphi %s676_s11, %s875_s11   ;;  %s635_s10 = sphi %s674_s10, %s874_s10   ;;  %s631_s9 = sphi %s672_s9, %s873_s9  }
   0x7   : > { %p32_p0 = scmp.ge.s32.totalorder %s30_s16, 4  ;;  %s39_s17 = sadd.s32 1, %s639_s11 }
   0x8   : > { %p46_p1 = scmp.ne.s32.totalorder %s639_s11, %s635_s10  ;;  %p47_p2 = scmp.eq.s32.totalorder %s651_s14, 0 }
   0x9   : > { %s879_s16 = smov (%p32_p0, %s30_s16), 0  ;;  %p52_p4 = scmp.ne.s32.totalorder %s635_s10, %s631_s9 }
   0xa   : > { %p708_p3 = por %p47_p2, %p46_p1  ;;  %s34_s19 = ssub.s32 %s647_s13, %s879_s16 }
   0xb   : > { %p53_p5 = scmp.eq.s32.totalorder %s451_s15, 0  ;;  %p37_p6 = scmp.eq.s32.totalorder %s34_s19, 0 }
   0xc   : > { %p479_p8 = scmp.lt.s32.totalorder %s651_s14, 4  ;;  %s724_s22 = sand.u32 1, %s639_s11  }
   0xd   : > { %p715_p7 = por %p53_p5, %p52_p4  ;;  %s466_s23 = sshll.u32 %s647_s13, 7 }
   0xe   : > { %s721_s21 = scalar_select %p37_p6, %s639_s11, %s39_s17  }
   0xf   : > { %s864_s20 = scalar_select %p715_p7, 1, 0 }
  0x10   : > { %s455_s24 = sshll.u32 %s724_s22, 3  ;;  %s731_s27 = scalar_lea.hbm %s859_s0, %s466_s23 }
  0x11   : > { %s134_s28 = scalar_lea.vmem [#allocation3], %s455_s24  ;;  %p735_p9 = pnand %p479_p8, %p708_p3 }
  0x12   : > { %s144_s29 = sshll.u32 %s134_s28, 4  ;;  %s131_s3 = scalar_lea.sflag [#allocation4], %s724_s22  ;;  %s739_s29 = int_to_ptr.vmem [resolvable:$true] %s144_s29 }
  0x13   : > { %s537_s4 = scalar_lea.hbm %s731_s27, 128  ;;  %p539_p13 = pneg %p735_p9 }
  0x14   : > { %p538_p12 = scmp.ne.s32.totalorder %s731_s27, %s537_s4  ;;  %s542_s7 = scalar_lea.hbm %s859_s0, 512 }
  0x15   : > { %p543_p2 = scmp.lt.u32.totalorder %s731_s27, %s859_s0  ;;  %p544_p3 = scmp.lt.u32.totalorder %s542_s7, %s537_s4 }
  0x16   : > { %p540_p0 = pnand %p539_p13, %p538_p12  ;;  %p546_p5 = scmp.lt.u32.totalorder %s537_s4, %s731_s27 }
  0x17   : > { %p545_p4 = por %p544_p3, %p543_p2 }
  0x18   : > { %p541_p1 = pneg %p540_p0 }
  0x19   : > { %p547_p6 = por %p546_p5, %p545_p4 }
  0x1b   : > { %p548_p8 = pnand %p547_p6, %p541_p1 }
  0x1d   : > { %551 = shalt.err (!%p548_p8)
}
  0x1e   : > { %s552_s15 = scalar_lea.vmem %s739_s29, 128  ;;  %s653_s17 = smov [#allocation3]  }
  0x1f   : > { %p553_p12 = scmp.ne.s32.totalorder %s739_s29, %s552_s15  ;;  %s557_s18 = sshll.u32 %s653_s17, 4  ;;  %s558_s18 = int_to_ptr.vmem [resolvable:$false] %s557_s18 }
  0x20   : > { %s559_s19 = scalar_lea.vmem %s558_s18, 256  ;;  %p560_p11 = scmp.lt.s32.totalorder %s739_s29, %s558_s18 }
  0x21   : > { %p555_p0 = pnand %p553_p12, %p539_p13  ;;  %p561_p2 = scmp.lt.s32.totalorder %s559_s19, %s552_s15 }
  0x23   : > { %p556_p10 = pneg %p555_p0  ;;  %p562_p3 = por %p561_p2, %p560_p11 }
  0x25   : > { %p563_p4 = pnand %p562_p3, %p556_p10 }
  0x27   : > { %566 = shalt.err (!%p563_p4)
}
  0x28   : > { %475 = dma.hbm_to_vmem [thread:$0]  (!%p735_p9), %s731_s27, 128, %s739_s29, %s131_s3  }
  0x29   : > { %p866_p1 = scmp.lt.s32.totalorder %s651_s14, 5  ;;  %p867_p5 = scmp.ge.s32.totalorder %s651_s14, 1 }
  0x2a   : > { %s458_s24 = sshll.u32 %s724_s22, 1  ;;  %s467_s25 = sshll.u32 %s647_s13, 5 }
  0x2b   : > { %p773_p6 = pnand %p867_p5, %p866_p1  ;;  %s782_s4 = scalar_lea.hbm %s860_s1, %s467_s25 }
  0x2c   : > { %s155_s5 = scalar_lea.vmem [#allocation5], %s458_s24  ;;  %s152_s27 = scalar_lea.sflag [#allocation6], %s724_s22 }
  0x2d   : > { %s868_s23 = scalar_select %p773_p6, 1, 0 }
  0x2e   : > { %s165_s6 = sshll.u32 %s155_s5, 4  ;;  %s567_s29 = scalar_lea.hbm %s782_s4, 32  ;;  %s166_s6 = int_to_ptr.vmem [resolvable:$true] %s165_s6 }
  0x2f   : > { %p568_p10 = scmp.ne.s32.totalorder %s782_s4, %s567_s29  ;;  %s572_s8 = scalar_lea.hbm %s860_s1, 128 }
  0x30   : > { %p573_p12 = scmp.lt.u32.totalorder %s782_s4, %s860_s1  ;;  %p574_p0 = scmp.lt.u32.totalorder %s572_s8, %s567_s29 }
  0x31   : > { %p570_p11 = pnand %p568_p10, %p539_p13  ;;  %p576_p3 = scmp.lt.u32.totalorder %s567_s29, %s782_s4 }
  0x32   : > { %p575_p2 = por %p574_p0, %p573_p12 }
  0x33   : > { %p571_p8 = pneg %p570_p11 }
  0x34   : > { %p577_p4 = por %p576_p3, %p575_p2 }
  0x36   : > { %p578_p1 = pnand %p577_p4, %p571_p8 }
  0x38   : > { %581 = shalt.err (!%p578_p1)
}
  0x39   : > { %s582_s22 = scalar_lea.vmem %s166_s6, 32  ;;  %s654_s17 = smov [#allocation5]  }
  0x3a   : > { %p583_p5 = scmp.ne.s32.totalorder %s166_s6, %s582_s22  ;;  %s587_s18 = sshll.u32 %s654_s17, 4  ;;  %s588_s18 = int_to_ptr.vmem [resolvable:$false] %s587_s18 }
  0x3b   : > { %s589_s19 = scalar_lea.vmem %s588_s18, 64  ;;  %p590_p7 = scmp.lt.s32.totalorder %s166_s6, %s588_s18 }
  0x3c   : > { %p585_p10 = pnand %p583_p5, %p539_p13  ;;  %p591_p6 = scmp.lt.s32.totalorder %s589_s19, %s582_s22 }
  0x3e   : > { %p586_p11 = pneg %p585_p10  ;;  %p592_p0 = por %p591_p6, %p590_p7 }
  0x40   : > { %p593_p12 = pnand %p592_p0, %p586_p11 }
  0x42   : > { %596 = shalt.err (!%p593_p12)
}
  0x43   : > { %478 = dma.hbm_to_vmem [thread:$0]  (!%p735_p9), %s782_s4, 32, %s166_s6, %s152_s27  }
  0x44   : > { %p869_p8 = scmp.ne.s32.totalorder %s868_s23, 0 }
  0x45   : > { %s176_s24 = sand.u32 (!%p869_p8), 1, %s635_s10   ;;  %p870_p13 = scmp.ne.s32.totalorder (!%p869_p8), %s864_s20, 0 }
  0x46   : > { %174 = sbr.rel (%p869_p8) target bundleno = 310 (0x136), region = 28  ;;  %s462_s25 = sshll.u32 (!%p869_p8), %s176_s24, 3 }
  0x47   : > { %s177_s26 = scalar_lea.sflag (!%p869_p8), [#allocation4], %s176_s24  ;;  %s180_s28 = scalar_lea.vmem (!%p869_p8), [#allocation3], %s462_s25 }
  0x4d   : > { %622 = dma.done.wait (%p870_p13), %s177_s26, 128  }
  0x4e   : > { %624 = vsyncadd (%p870_p13), %s177_s26, 4294967168  ;;  %s463_s5 = sshll.u32 %s176_s24, 1  ;;  %s186_s29 = scalar_lea.sflag [#allocation6], %s176_s24 }
  0x4f   : > { %s189_s30 = scalar_lea.vmem [#allocation5], %s463_s5 }
  0x50   : > { %626 = dma.done.wait (%p870_p13), %s186_s29, 32  }
  0x51   : > { %628 = vsyncadd (%p870_p13), %s186_s29, 4294967264  ;;  %v222_v0 = vlaneseq  ;;  %v655_v2 = vmov 0.0   ;;  %vm232_vm1 = vcmask 1043456   ;;  %v227_v3 = vld [vmem:[%s180_s28] sm:$0xff]  ;;  %v228_v24 = vld [vmem:[%s189_s30] sm:$0x3] }
  0x52   : > { %v230_v4 = vcombine.high %v227_v3, %v227_v3  ;;  %v233_v5 = vsel %vm232_vm1, %v227_v3, -inf  ;;  %v656_v58 = vmov 1966171168   ;;  %vm347_vm4 = vcmask 1040384   ;;  %p215_p7 = scmp.lt.s32.totalorder %s643_s12, 3 }
  0x53   : > { %vm815_vm0 = vcmp.lt.s32.totalorder %v222_v0, 256  ;;  %v234_v6 = vrot.slane %v233_v5, 4  ;;  %v823_v20 = vshrl.u32 %v222_v0, 7  ;;  %v312_v59 = vunpack.c.l.s4 %v656_v58 }
  0x54   : > { %226 = vst.msk [vmem:[#allocation2] sm:$0x3] %vm815_vm0, %v655_v2  ;;  %v240_v7 = vsel %vm232_vm1, %v230_v4, -inf  ;;  %s881_s12 = smov (!%p215_p7, %s643_s12), 3  ;;  %vm353_vm5 = vcmask 0  }
  0x55   : > { %v235_v8 = vmax.f32 %v233_v5, %v234_v6  ;;  %v241_v9 = vrot.slane %v240_v7, 4  ;;  %v281_v23 = vsub.s32 0, %v823_v20  ;;  %v285_v25 = vsub.s32 1, %v823_v20  ;;  %s217_s4 = scalar_lea.vmem %s861_s2, %s881_s12 }
  0x57   : > { %v236_v10 = vrot.slane %v235_v8, 2  ;;  %v242_v11 = vmax.f32 %v240_v7, %v241_v9  ;;  %v282_v26 = vrot.slane %v228_v24, %v281_v23  ;;  %v286_v27 = vrot.slane %v228_v24, %v285_v25 }
  0x59   : > { %v237_v12 = vmax.f32 %v235_v8, %v236_v10  ;;  %v243_v13 = vrot.slane %v242_v11, 2  ;;  %vm287_vm2 = vcmp.eq.s32.totalorder %v823_v20, %v282_v26  ;;  %vm288_vm3 = vcmp.eq.s32.totalorder %v823_v20, %v286_v27 }
  0x5a   : > { %v289_v28 = vsel %vm287_vm2, %v227_v3, 0.0  ;;  %v290_v32 = vsel %vm288_vm3, %v230_v4, 0.0  ;;  %v313_v4 = vunpack.c.0.s8 %v312_v59 }
  0x5b   : > { %v238_v14 = vrot.slane %v237_v12, 1  ;;  %v244_v15 = vmax.f32 %v242_v11, %v243_v13  ;;  %v291_v34 = vsel %vm232_vm1, %v289_v28, 0.0  ;;  %v298_v38 = vsel %vm232_vm1, %v290_v32, 0.0  ;;  %v305_v11 = vld [vmem:[#allocation2] sm:$0x3] }
  0x5c   : > { %v292_v39 = vrot.slane %v291_v34, 4  ;;  %v299_v42 = vrot.slane %v298_v38, 4  ;;  %v316_v8 = vsub.s32 %v313_v4, %v823_v20 }
  0x5d   : > { %v239_v16 = vmax.f32 %v237_v12, %v238_v14  ;;  %v245_v17 = vrot.slane %v244_v15, 1 }
  0x5e   : > { %v293_v45 = vadd.f32 %v292_v39, %v291_v34  ;;  %v300_v48 = vadd.f32 %v299_v42, %v298_v38 }
  0x5f   : > { %v246_v18 = vmax.f32 %v244_v15, %v245_v17 }
  0x60   : > { %v294_v51 = vrot.slane %v293_v45, 2  ;;  %v301_v53 = vrot.slane %v300_v48, 2 }
  0x61   : > { %v249_v19 = vcombine.low %v239_v16, %v246_v18 }
  0x62   : > { %v295_v54 = vadd.f32 %v294_v51, %v293_v45  ;;  %v302_v55 = vadd.f32 %v301_v53, %v300_v48 }
  0x63   : > { %v251_v21 = vsub.f32 %v227_v3, %v249_v19 }
  0x64   : > { %v296_v56 = vrot.slane %v295_v54, 1  ;;  %v303_v57 = vrot.slane %v302_v55, 1 }
  0x65   : > { %v252_v22 = vmul.f32 1.442695, %v251_v21 }
  0x66   : > { %v297_v62 = vadd.f32 %v296_v56, %v295_v54  ;;  %v304_v3 = vadd.f32 %v303_v57, %v302_v55 }
  0x67   : > { %531 = vpow2.f32 %v252_v22 }
  0x71   : > { %v532_v29 = vpop.eup %531 }
  0x72   : > { %v255_v30 = vcombine.high %v532_v29, %v532_v29  ;;  %v257_v31 = vsel %vm232_vm1, %v532_v29, 0.0 }
  0x73   : > { %v258_v33 = vrot.slane %v257_v31, 4 }
  0x74   : > { %v264_v35 = vsel %vm232_vm1, %v255_v30, 0.0 }
  0x75   : > { %v259_v36 = vadd.f32 %v258_v33, %v257_v31  ;;  %v265_v37 = vrot.slane %v264_v35, 4 }
  0x77   : > { %v260_v40 = vrot.slane %v259_v36, 2  ;;  %v266_v41 = vadd.f32 %v265_v37, %v264_v35 }
  0x79   : > { %v261_v43 = vadd.f32 %v260_v40, %v259_v36  ;;  %v267_v44 = vrot.slane %v266_v41, 2 }
  0x7b   : > { %v262_v46 = vrot.slane %v261_v43, 1  ;;  %v268_v47 = vadd.f32 %v267_v44, %v266_v41 }
  0x7d   : > { %v263_v49 = vadd.f32 %v262_v46, %v261_v43  ;;  %v269_v50 = vrot.slane %v268_v47, 1 }
  0x7f   : > { %v270_v52 = vadd.f32 %v269_v50, %v268_v47  ;;  %533 = vlog2.f32 %v263_v49 }
  0x81   : > { %535 = vlog2.f32 %v270_v52 }
  0x89   : > { %v534_v60 = vpop.eup %533 }
  0x8a   : > { %v272_v61 = vmul.f32 0.6931472, %v534_v60 }
  0x8b   : > { %v536_v63 = vpop.eup %535 }
  0x8c   : > { %v274_v0 = vmul.f32 0.6931472, %v536_v63  ;;  %v275_v2 = vadd.f32 %v272_v61, %v239_v16 }
  0x8e   : > { %v276_v5 = vadd.f32 %v274_v0, %v246_v18  ;;  %v306_v6 = vsub.f32 %v275_v2, %v297_v62 }
  0x90   : > { %v307_v7 = vsub.f32 %v276_v5, %v304_v3 }
  0x92   : > { %v310_v9 = vcombine.low %v306_v6, %v307_v7 }
  0x94   : > { %v317_v10 = vrot.slane %v310_v9, %v316_v8 }
  0x96   : > { %v324_v12 = vrot.slane %v317_v10, %v316_v8 }
  0x98   : > { %v326_v13 = vadd.f32 %v324_v12, %v305_v11 }
  0x9a   : > { %331 = vst.msk [vmem:[#allocation2] sm:$0x3] %vm815_vm0, %v326_v13 }
  0xa1   : > { %v335_v14 = vld [vmem:[#allocation2] sm:$0x3] }
  0xa2   : > { %v340_v15 = vrot.slane %v335_v14, %v281_v23  ;;  %v344_v16 = vrot.slane %v335_v14, %v285_v25 }
  0xa4   : > { %v348_v17 = vsel %vm347_vm4, %v340_v15, 0.0  ;;  %v349_v18 = vsel %vm347_vm4, %v344_v16, 0.0 }
  0xa5   : > { %v350_v19 = vadd.f32 %v349_v18, %v348_v17 }
  0xa7   : > { %351 = vadd.xlane.f32.xlu0 %v350_v19 }
 0x134   : > { %v352_v20 = vpop.xlane.xlu0 %351 }
 0x135   : > { %354 = vst.msk [vmem:[%s217_s4] sm:$0x1] %vm353_vm5, %v352_v20 }
 0x136 PF: > { %s18_s14 = sadd.s32 1, %s651_s14   ;;  %s873_s9 = smov %s635_s10 }
 0x137   : > { %p15_p9 = scmp.ge.s32.totalorder %s18_s14, 6   ;;  %s874_s10 = smov %s639_s11 }
 0x138   : > { %s875_s11 = smov %s721_s21  ;;  %s876_s12 = smov %s647_s13 }
 0x139   : > { %s877_s13 = smov %s879_s16  ;;  %17 = sbr.rel (!%p15_p9) target bundleno = 6 (0x6), region = 89 }
 0x140   :  { %372 = vsyncpa [#allocation4], 1 }
 0x141   :  { %374 = vsyncpa [#allocation4 + $0x1], 1 }
 0x142   :  { %375 = vsyncpa [#allocation6], 1 }
 0x143   :  { %377 = vsyncpa [#allocation6 + $0x1], 1 }

</bundles_post_ra>
